<compile_context>
chip_gen: v7x
topology: tpu7x:2x2x1
jax: 0.10.0
libtpu: 0.0.40
codegen_flags: <defaults>
</compile_context>

<pallas_src>
import functools
import math

import jax
import jax.numpy as jnp
from jax.experimental import pallas as pl
from jax.experimental.pallas import tpu as pltpu


def encoder_layer_kernel(x_ref, bias_ref,
                         wqkv_ref, bqkv_ref,
                         wo_ref, bo_ref, g0_ref, beta0_ref,
                         w1_ref, b1_ref, w2_ref, b2_ref, g1_ref, beta1_ref,
                         out_ref, attn_ref,
                         *, num_heads, eps=1e-6):
    # One grid step == one batch element (whole [S, D] slab fits in VMEM).
    x = x_ref[0]                     # [S, D]
    bias = bias_ref[0]               # [S, S] additive mask (0.0 or -1e9)
    S, D = x.shape
    dh = D // num_heads
    scale = 1.0 / math.sqrt(dh)
    inv_d = 1.0 / D

    # --- fused Q/K/V projection: one MXU push [S,D] x [D,3D] ---
    qkv = jnp.dot(x, wqkv_ref[...], preferred_element_type=jnp.float32) + bqkv_ref[...]
    # split heads once: [S, 3D] -> [3H, S, dh]; static leading-dim slices for q/k/v
    qkvh = jnp.transpose(qkv.reshape(S, 3 * num_heads, dh), (1, 0, 2))
    q = qkvh[0:num_heads]                      # [H, S, dh]
    k = qkvh[num_heads:2 * num_heads]          # [H, S, dh]
    v = qkvh[2 * num_heads:3 * num_heads]      # [H, S, dh]

    # --- head-batched attention scores (no explicit K transpose) ---
    s = jnp.einsum("hqd,hkd->hqk", q, k,
                   preferred_element_type=jnp.float32) * scale   # [H, S, S]
    s = s + bias[None, :, :]
    m = jnp.max(s, axis=-1, keepdims=True)
    e = jnp.exp(s - m)
    l = jnp.sum(e, axis=-1, keepdims=True)
    p = e * (1.0 / l)                                            # exact normalization
    attn_ref[0] = p                  # single lane-dense [H, S, S] slab store

    ctx = jnp.einsum("hqk,hkd->hqd", p, v,
                     preferred_element_type=jnp.float32)         # [H, S, dh]
    ctx = jnp.transpose(ctx, (1, 0, 2)).reshape(S, D)            # [S, D]

    attn_out = jnp.dot(ctx, wo_ref[...], preferred_element_type=jnp.float32) + bo_ref[...]

    # dropout0: identity (inference semantics of nn.Dropout)
    y = attn_out + x
    s1 = jnp.sum(y, axis=-1, keepdims=True)
    s2 = jnp.sum(y * y, axis=-1, keepdims=True)
    mu = s1 * inv_d
    var = s2 * inv_d - mu * mu
    y = (y - mu) * jax.lax.rsqrt(var + eps) * g0_ref[...] + beta0_ref[...]

    # --- position-wise feed-forward: relu(y W1 + b1) W2 + b2 ---
    h1 = jnp.maximum(
        jnp.dot(y, w1_ref[...], preferred_element_type=jnp.float32) + b1_ref[...], 0.0)
    ff = jnp.dot(h1, w2_ref[...], preferred_element_type=jnp.float32) + b2_ref[...]

    # dropout1: identity (inference semantics of nn.Dropout)
    z = ff + y
    t1 = jnp.sum(z, axis=-1, keepdims=True)
    t2 = jnp.sum(z * z, axis=-1, keepdims=True)
    mu2 = t1 * inv_d
    var2 = t2 * inv_d - mu2 * mu2
    z = (z - mu2) * jax.lax.rsqrt(var2 + eps) * g1_ref[...] + beta1_ref[...]

    out_ref[0] = z


def encoder_layer(x, mask, params, num_heads):
    B, S, D = x.shape
    d_hidden = params["w1"].shape[1]

    # Wrapper-side fusions / precompute (one-time XLA ops, not per-kernel work).
    wqkv = jnp.concatenate([params["wq"], params["wk"], params["wv"]], axis=1)  # [D, 3D]
    bqkv = jnp.concatenate([params["bq"], params["bk"], params["bv"]], axis=1)  # [1, 3D]
    mask_bias = jnp.where(mask > 0, 0.0, -1e9).astype(jnp.float32)              # additive

    def full(shape):
        return pl.BlockSpec(shape, lambda b, _n=len(shape): (0,) * _n)

    in_specs = [
        pl.BlockSpec((1, S, D), lambda b: (b, 0, 0)),     # x
        pl.BlockSpec((1, S, S), lambda b: (b, 0, 0)),     # additive mask bias
        full((D, 3 * D)), full((1, 3 * D)),               # fused Wqkv, bqkv
        full((D, D)), full((1, D)),                       # Wo, bo
        full((1, D)), full((1, D)),                       # ln0 gamma/beta
        full((D, d_hidden)), full((1, d_hidden)),         # W1, b1
        full((d_hidden, D)), full((1, D)),                # W2, b2
        full((1, D)), full((1, D)),                       # ln1 gamma/beta
    ]
    out_specs = [
        pl.BlockSpec((1, S, D), lambda b: (b, 0, 0)),
        pl.BlockSpec((1, num_heads, S, S), lambda b: (b, 0, 0, 0)),
    ]
    out_shape = (jax.ShapeDtypeStruct((B, S, D), jnp.float32),
                 jax.ShapeDtypeStruct((B, num_heads, S, S), jnp.float32))

    kernel = functools.partial(encoder_layer_kernel, num_heads=num_heads)
    return pl.pallas_call(
        kernel,
        out_shape=out_shape,
        grid_spec=pltpu.PrefetchScalarGridSpec(
            num_scalar_prefetch=0,
            grid=(B,),
            in_specs=in_specs,
            out_specs=out_specs,
        ),
        compiler_params=pltpu.CompilerParams(
            dimension_semantics=("parallel",),      # uses both TCs on v7x when B>=2
            vmem_limit_bytes=32 * 1024 * 1024,
        ),
    )(x, mask_bias, wqkv, bqkv,
      params["wo"], params["bo"], params["g0"], params["beta0"],
      params["w1"], params["b1"], params["w2"], params["b2"],
      params["g1"], params["beta1"])


def reference(x, mask, params, num_heads):
    B, S, D = x.shape
    dh = D // num_heads

    def ln(y, g, b, eps=1e-6):
        mu = y.mean(-1, keepdims=True)
        var = ((y - mu) ** 2).mean(-1, keepdims=True)
        return (y - mu) / jnp.sqrt(var + eps) * g + b

    q = (x @ params["wq"] + params["bq"]).reshape(B, S, num_heads, dh).transpose(0, 2, 1, 3)
    k = (x @ params["wk"] + params["bk"]).reshape(B, S, num_heads, dh).transpose(0, 2, 1, 3)
    v = (x @ params["wv"] + params["bv"]).reshape(B, S, num_heads, dh).transpose(0, 2, 1, 3)
    s = jnp.einsum("bhqd,bhkd->bhqk", q, k) / jnp.sqrt(dh)
    s = jnp.where(mask[:, None, :, :] > 0, s, -1e9)
    attn = jax.nn.softmax(s, axis=-1)
    ctx = jnp.einsum("bhqk,bhkd->bhqd", attn, v).transpose(0, 2, 1, 3).reshape(B, S, D)
    ao = ctx @ params["wo"] + params["bo"]
    y = ln(ao + x, params["g0"], params["beta0"])
    ff = jnp.maximum(y @ params["w1"] + params["b1"], 0.0) @ params["w2"] + params["b2"]
    return ln(ff + y, params["g1"], params["beta1"]), attn


if __name__ == "__main__":
    B, S, H, D, DH = 2, 8, 4, 32, 64   # small shapes (d_model=32, heads=4, d_hidden=64)
    key = jax.random.PRNGKey(0)
    keys = jax.random.split(key, 17)

    def w(k, shape, s=0.05):
        return (s * jax.random.normal(k, shape)).astype(jnp.float32)

    params = dict(
        wq=w(keys[0], (D, D)), bq=w(keys[1], (1, D)),
        wk=w(keys[2], (D, D)), bk=w(keys[3], (1, D)),
        wv=w(keys[4], (D, D)), bv=w(keys[5], (1, D)),
        wo=w(keys[6], (D, D)), bo=w(keys[7], (1, D)),
        g0=(1.0 + w(keys[8], (1, D))), beta0=w(keys[9], (1, D)),
        w1=w(keys[10], (D, DH)), b1=w(keys[11], (1, DH)),
        w2=w(keys[12], (DH, D)), b2=w(keys[13], (1, D)),
        g1=(1.0 + w(keys[14], (1, D))), beta1=w(keys[15], (1, D)),
    )
    x = jax.random.normal(keys[16], (B, S, D), dtype=jnp.float32)

    # key-padding style mask: batch 0 sees all keys, batch 1 masks the last 2
    valid = jnp.array([S, S - 2])
    mask = (jnp.arange(S)[None, None, :] < valid[:, None, None]).astype(jnp.float32)
    mask = jnp.broadcast_to(mask, (B, S, S))

    out, attn = encoder_layer(x, mask, params, num_heads=H)
    jax.block_until_ready(out)
    jax.block_until_ready(attn)

    out_r, attn_r = reference(x, mask, params, num_heads=H)
    assert jnp.allclose(out, out_r, atol=1e-4, rtol=1e-4), "output mismatch"
    assert jnp.allclose(attn, attn_r, atol=1e-5, rtol=1e-5), "attn mismatch"
    print("KERNEL_OK")
</pallas_src>

<mosaic_0001>
module attributes {stable_mosaic.version = 11 : i64} {
  func.func @encoder_layer_kernel(%arg0: i32, %arg1: memref<1x8x32xf32, #tpu.memory_space<vmem>>, %arg2: memref<1x8x8xf32, #tpu.memory_space<vmem>>, %arg3: memref<32x96xf32, #tpu.memory_space<vmem>>, %arg4: memref<1x96xf32, #tpu.memory_space<vmem>>, %arg5: memref<32x32xf32, #tpu.memory_space<vmem>>, %arg6: memref<1x32xf32, #tpu.memory_space<vmem>>, %arg7: memref<1x32xf32, #tpu.memory_space<vmem>>, %arg8: memref<1x32xf32, #tpu.memory_space<vmem>>, %arg9: memref<32x64xf32, #tpu.memory_space<vmem>>, %arg10: memref<1x64xf32, #tpu.memory_space<vmem>>, %arg11: memref<64x32xf32, #tpu.memory_space<vmem>>, %arg12: memref<1x32xf32, #tpu.memory_space<vmem>>, %arg13: memref<1x32xf32, #tpu.memory_space<vmem>>, %arg14: memref<1x32xf32, #tpu.memory_space<vmem>>, %arg15: memref<1x8x32xf32, #tpu.memory_space<vmem>>, %arg16: memref<1x4x8x8xf32, #tpu.memory_space<vmem>>) attributes {dimension_semantics = [#tpu.dimension_semantics<parallel>], iteration_bounds = array<i64: 2>, scalar_prefetch = 0 : i64, scratch_operands = 0 : i64, tpu.core_type = #tpu.core_type<tc>, window_params = [{transform_indices = @transform_0, window_bounds = array<i64: 1, 8, 32>}, {transform_indices = @transform_1, window_bounds = array<i64: 1, 8, 8>}, {pipeline_mode = #tpu.pipeline_mode<synchronous>, transform_indices = @transform_2, window_bounds = array<i64: 32, 96>}, {pipeline_mode = #tpu.pipeline_mode<synchronous>, transform_indices = @transform_3, window_bounds = array<i64: 1, 96>}, {pipeline_mode = #tpu.pipeline_mode<synchronous>, transform_indices = @transform_4, window_bounds = array<i64: 32, 32>}, {pipeline_mode = #tpu.pipeline_mode<synchronous>, transform_indices = @transform_5, window_bounds = array<i64: 1, 32>}, {pipeline_mode = #tpu.pipeline_mode<synchronous>, transform_indices = @transform_6, window_bounds = array<i64: 1, 32>}, {pipeline_mode = #tpu.pipeline_mode<synchronous>, transform_indices = @transform_7, window_bounds = array<i64: 1, 32>}, {pipeline_mode = #tpu.pipeline_mode<synchronous>, transform_indices = @transform_8, window_bounds = array<i64: 32, 64>}, {pipeline_mode = #tpu.pipeline_mode<synchronous>, transform_indices = @transform_9, window_bounds = array<i64: 1, 64>}, {pipeline_mode = #tpu.pipeline_mode<synchronous>, transform_indices = @transform_10, window_bounds = array<i64: 64, 32>}, {pipeline_mode = #tpu.pipeline_mode<synchronous>, transform_indices = @transform_11, window_bounds = array<i64: 1, 32>}, {pipeline_mode = #tpu.pipeline_mode<synchronous>, transform_indices = @transform_12, window_bounds = array<i64: 1, 32>}, {pipeline_mode = #tpu.pipeline_mode<synchronous>, transform_indices = @transform_13, window_bounds = array<i64: 1, 32>}, {transform_indices = @transform_14, window_bounds = array<i64: 1, 8, 32>}, {transform_indices = @transform_15, window_bounds = array<i64: 1, 4, 8, 8>}]} {
    %c0 = arith.constant 0 : index
    %c0_0 = arith.constant 0 : index
    %c0_1 = arith.constant 0 : index
    %0 = vector.load %arg1[%c0, %c0_0, %c0_1] : memref<1x8x32xf32, #tpu.memory_space<vmem>>, vector<1x8x32xf32>
    %1 = vector.shape_cast %0 : vector<1x8x32xf32> to vector<8x32xf32>
    %c0_2 = arith.constant 0 : index
    %c0_3 = arith.constant 0 : index
    %c0_4 = arith.constant 0 : index
    %2 = vector.load %arg2[%c0_2, %c0_3, %c0_4] : memref<1x8x8xf32, #tpu.memory_space<vmem>>, vector<1x8x8xf32>
    %3 = vector.shape_cast %2 : vector<1x8x8xf32> to vector<8x8xf32>
    %c0_5 = arith.constant 0 : index
    %c0_6 = arith.constant 0 : index
    %4 = vector.load %arg3[%c0_5, %c0_6] : memref<32x96xf32, #tpu.memory_space<vmem>>, vector<32x96xf32>
    %cst = arith.constant dense<0.000000e+00> : vector<8x96xf32>
    %5 = tpu.matmul %1, %4, %cst {dimension_numbers = #tpu.dot_dimension_numbers<[1], [0], [0], [1], [0, 0, 1, 1], [], []>} : vector<8x32xf32>, vector<32x96xf32>, vector<8x96xf32> -> vector<8x96xf32>
    %c0_7 = arith.constant 0 : index
    %c0_8 = arith.constant 0 : index
    %6 = vector.load %arg4[%c0_7, %c0_8] : memref<1x96xf32, #tpu.memory_space<vmem>>, vector<1x96xf32>
    %7 = vector.broadcast %6 : vector<1x96xf32> to vector<8x96xf32>
    %8 = arith.addf %5, %7 : vector<8x96xf32>
    %9 = vector.shape_cast %8 : vector<8x96xf32> to vector<8x12x8xf32>
    %10 = tpu.transpose %9, [1, 0, 2] : vector<8x12x8xf32> -> vector<12x8x8xf32>
    %11 = vector.extract_strided_slice %10 {offsets = [0, 0, 0], sizes = [4, 8, 8], strides = [1, 1, 1]} : vector<12x8x8xf32> to vector<4x8x8xf32>
    %12 = vector.extract_strided_slice %10 {offsets = [4, 0, 0], sizes = [4, 8, 8], strides = [1, 1, 1]} : vector<12x8x8xf32> to vector<4x8x8xf32>
    %13 = vector.extract_strided_slice %10 {offsets = [8, 0, 0], sizes = [4, 8, 8], strides = [1, 1, 1]} : vector<12x8x8xf32> to vector<4x8x8xf32>
    "tpu.trace_start"() <{level = 10 : i32, message = "hqd,hkd->hqk"}> : () -> ()
    %cst_9 = arith.constant dense<0.000000e+00> : vector<4x8x8xf32>
    %14 = tpu.matmul %11, %12, %cst_9 {dimension_numbers = #tpu.dot_dimension_numbers<[2], [2], [1], [1], [0, 0, 0, 1, 1, 1], [0], [0]>} : vector<4x8x8xf32>, vector<4x8x8xf32>, vector<4x8x8xf32> -> vector<4x8x8xf32>
    "tpu.trace_stop"() : () -> ()
    %cst_10 = arith.constant 0.353553385 : f32
    %15 = vector.broadcast %cst_10 : f32 to vector<4x8x8xf32>
    %16 = arith.mulf %14, %15 : vector<4x8x8xf32>
    %17 = vector.shape_cast %3 : vector<8x8xf32> to vector<1x8x8xf32>
    %18 = vector.broadcast %17 : vector<1x8x8xf32> to vector<4x8x8xf32>
    %19 = arith.addf %16, %18 : vector<4x8x8xf32>
    %cst_11 = arith.constant dense<0xFF800000> : vector<4x8xf32>
    %20 = vector.multi_reduction <maximumf>, %19, %cst_11 [2] : vector<4x8x8xf32> to vector<4x8xf32>
    %21 = vector.shape_cast %20 : vector<4x8xf32> to vector<4x8x1xf32>
    %22 = vector.broadcast %21 : vector<4x8x1xf32> to vector<4x8x8xf32>
    %23 = arith.subf %19, %22 : vector<4x8x8xf32>
    %24 = math.exp %23 : vector<4x8x8xf32>
    %cst_12 = arith.constant dense<0.000000e+00> : vector<4x8xf32>
    %25 = vector.multi_reduction <add>, %24, %cst_12 [2] : vector<4x8x8xf32> to vector<4x8xf32>
    %26 = vector.shape_cast %25 : vector<4x8xf32> to vector<4x8x1xf32>
    %cst_13 = arith.constant 1.000000e+00 : f32
    %27 = vector.broadcast %cst_13 : f32 to vector<4x8x1xf32>
    %28 = arith.divf %27, %26 : vector<4x8x1xf32>
    %29 = vector.broadcast %28 : vector<4x8x1xf32> to vector<4x8x8xf32>
    %30 = arith.mulf %24, %29 : vector<4x8x8xf32>
    %c0_14 = arith.constant 0 : index
    %c0_15 = arith.constant 0 : index
    %c0_16 = arith.constant 0 : index
    %c0_17 = arith.constant 0 : index
    %31 = vector.load %arg16[%c0_14, %c0_15, %c0_16, %c0_17] : memref<1x4x8x8xf32, #tpu.memory_space<vmem>>, vector<1x4x8x8xf32>
    %32 = vector.shape_cast %31 : vector<1x4x8x8xf32> to vector<4x8x8xf32>
    %33 = vector.shape_cast %30 : vector<4x8x8xf32> to vector<1x4x8x8xf32>
    tpu.vector_store %arg16[%c0_14, %c0_15, %c0_16, %c0_17], %33 {strides = array<i32>} : memref<1x4x8x8xf32, #tpu.memory_space<vmem>>, vector<1x4x8x8xf32>,
    "tpu.trace_start"() <{level = 10 : i32, message = "hqk,hkd->hqd"}> : () -> ()
    %cst_18 = arith.constant dense<0.000000e+00> : vector<4x8x8xf32>
    %34 = tpu.matmul %30, %13, %cst_18 {dimension_numbers = #tpu.dot_dimension_numbers<[2], [1], [1], [2], [0, 0, 0, 1, 1, 2], [0], [0]>} : vector<4x8x8xf32>, vector<4x8x8xf32>, vector<4x8x8xf32> -> vector<4x8x8xf32>
    "tpu.trace_stop"() : () -> ()
    %35 = tpu.transpose %34, [1, 0, 2] : vector<4x8x8xf32> -> vector<8x4x8xf32>
    %36 = vector.shape_cast %35 : vector<8x4x8xf32> to vector<8x32xf32>
    %c0_19 = arith.constant 0 : index
    %c0_20 = arith.constant 0 : index
    %37 = vector.load %arg5[%c0_19, %c0_20] : memref<32x32xf32, #tpu.memory_space<vmem>>, vector<32x32xf32>
    %cst_21 = arith.constant dense<0.000000e+00> : vector<8x32xf32>
    %38 = tpu.matmul %36, %37, %cst_21 {dimension_numbers = #tpu.dot_dimension_numbers<[1], [0], [0], [1], [0, 0, 1, 1], [], []>} : vector<8x32xf32>, vector<32x32xf32>, vector<8x32xf32> -> vector<8x32xf32>
    %c0_22 = arith.constant 0 : index
    %c0_23 = arith.constant 0 : index
    %39 = vector.load %arg6[%c0_22, %c0_23] : memref<1x32xf32, #tpu.memory_space<vmem>>, vector<1x32xf32>
    %40 = vector.broadcast %39 : vector<1x32xf32> to vector<8x32xf32>
    %41 = arith.addf %38, %40 : vector<8x32xf32>
    %42 = arith.addf %41, %1 : vector<8x32xf32>
    %cst_24 = arith.constant dense<0.000000e+00> : vector<8xf32>
    %43 = vector.multi_reduction <add>, %42, %cst_24 [1] : vector<8x32xf32> to vector<8xf32>
    %44 = vector.shape_cast %43 : vector<8xf32> to vector<8x1xf32>
    %45 = arith.mulf %42, %42 : vector<8x32xf32>
    %cst_25 = arith.constant dense<0.000000e+00> : vector<8xf32>
    %46 = vector.multi_reduction <add>, %45, %cst_25 [1] : vector<8x32xf32> to vector<8xf32>
    %47 = vector.shape_cast %46 : vector<8xf32> to vector<8x1xf32>
    %cst_26 = arith.constant 3.125000e-02 : f32
    %48 = vector.broadcast %cst_26 : f32 to vector<8x1xf32>
    %49 = arith.mulf %44, %48 : vector<8x1xf32>
    %cst_27 = arith.constant 3.125000e-02 : f32
    %50 = vector.broadcast %cst_27 : f32 to vector<8x1xf32>
    %51 = arith.mulf %47, %50 : vector<8x1xf32>
    %52 = arith.mulf %49, %49 : vector<8x1xf32>
    %53 = arith.subf %51, %52 : vector<8x1xf32>
    %54 = vector.broadcast %49 : vector<8x1xf32> to vector<8x32xf32>
    %55 = arith.subf %42, %54 : vector<8x32xf32>
    %cst_28 = arith.constant 9.99999997E-7 : f32
    %56 = vector.broadcast %cst_28 : f32 to vector<8x1xf32>
    %57 = arith.addf %53, %56 : vector<8x1xf32>
    %58 = math.rsqrt %57 : vector<8x1xf32>
    %59 = vector.broadcast %58 : vector<8x1xf32> to vector<8x32xf32>
    %60 = arith.mulf %55, %59 : vector<8x32xf32>
    %c0_29 = arith.constant 0 : index
    %c0_30 = arith.constant 0 : index
    %61 = vector.load %arg7[%c0_29, %c0_30] : memref<1x32xf32, #tpu.memory_space<vmem>>, vector<1x32xf32>
    %62 = vector.broadcast %61 : vector<1x32xf32> to vector<8x32xf32>
    %63 = arith.mulf %60, %62 : vector<8x32xf32>
    %c0_31 = arith.constant 0 : index
    %c0_32 = arith.constant 0 : index
    %64 = vector.load %arg8[%c0_31, %c0_32] : memref<1x32xf32, #tpu.memory_space<vmem>>, vector<1x32xf32>
    %65 = vector.broadcast %64 : vector<1x32xf32> to vector<8x32xf32>
    %66 = arith.addf %63, %65 : vector<8x32xf32>
    %c0_33 = arith.constant 0 : index
    %c0_34 = arith.constant 0 : index
    %67 = vector.load %arg9[%c0_33, %c0_34] : memref<32x64xf32, #tpu.memory_space<vmem>>, vector<32x64xf32>
    %cst_35 = arith.constant dense<0.000000e+00> : vector<8x64xf32>
    %68 = tpu.matmul %66, %67, %cst_35 {dimension_numbers = #tpu.dot_dimension_numbers<[1], [0], [0], [1], [0, 0, 1, 1], [], []>} : vector<8x32xf32>, vector<32x64xf32>, vector<8x64xf32> -> vector<8x64xf32>
    %c0_36 = arith.constant 0 : index
    %c0_37 = arith.constant 0 : index
    %69 = vector.load %arg10[%c0_36, %c0_37] : memref<1x64xf32, #tpu.memory_space<vmem>>, vector<1x64xf32>
    %70 = vector.broadcast %69 : vector<1x64xf32> to vector<8x64xf32>
    %71 = arith.addf %68, %70 : vector<8x64xf32>
    %cst_38 = arith.constant 0.000000e+00 : f32
    %72 = vector.broadcast %cst_38 : f32 to vector<8x64xf32>
    %73 = arith.maximumf %71, %72 : vector<8x64xf32>
    %c0_39 = arith.constant 0 : index
    %c0_40 = arith.constant 0 : index
    %74 = vector.load %arg11[%c0_39, %c0_40] : memref<64x32xf32, #tpu.memory_space<vmem>>, vector<64x32xf32>
    %cst_41 = arith.constant dense<0.000000e+00> : vector<8x32xf32>
    %75 = tpu.matmul %73, %74, %cst_41 {dimension_numbers = #tpu.dot_dimension_numbers<[1], [0], [0], [1], [0, 0, 1, 1], [], []>} : vector<8x64xf32>, vector<64x32xf32>, vector<8x32xf32> -> vector<8x32xf32>
    %c0_42 = arith.constant 0 : index
    %c0_43 = arith.constant 0 : index
    %76 = vector.load %arg12[%c0_42, %c0_43] : memref<1x32xf32, #tpu.memory_space<vmem>>, vector<1x32xf32>
    %77 = vector.broadcast %76 : vector<1x32xf32> to vector<8x32xf32>
    %78 = arith.addf %75, %77 : vector<8x32xf32>
    %79 = arith.addf %78, %66 : vector<8x32xf32>
    %cst_44 = arith.constant dense<0.000000e+00> : vector<8xf32>
    %80 = vector.multi_reduction <add>, %79, %cst_44 [1] : vector<8x32xf32> to vector<8xf32>
    %81 = vector.shape_cast %80 : vector<8xf32> to vector<8x1xf32>
    %82 = arith.mulf %79, %79 : vector<8x32xf32>
    %cst_45 = arith.constant dense<0.000000e+00> : vector<8xf32>
    %83 = vector.multi_reduction <add>, %82, %cst_45 [1] : vector<8x32xf32> to vector<8xf32>
    %84 = vector.shape_cast %83 : vector<8xf32> to vector<8x1xf32>
    %cst_46 = arith.constant 3.125000e-02 : f32
    %85 = vector.broadcast %cst_46 : f32 to vector<8x1xf32>
    %86 = arith.mulf %81, %85 : vector<8x1xf32>
    %cst_47 = arith.constant 3.125000e-02 : f32
    %87 = vector.broadcast %cst_47 : f32 to vector<8x1xf32>
    %88 = arith.mulf %84, %87 : vector<8x1xf32>
    %89 = arith.mulf %86, %86 : vector<8x1xf32>
    %90 = arith.subf %88, %89 : vector<8x1xf32>
    %91 = vector.broadcast %86 : vector<8x1xf32> to vector<8x32xf32>
    %92 = arith.subf %79, %91 : vector<8x32xf32>
    %cst_48 = arith.constant 9.99999997E-7 : f32
    %93 = vector.broadcast %cst_48 : f32 to vector<8x1xf32>
    %94 = arith.addf %90, %93 : vector<8x1xf32>
    %95 = math.rsqrt %94 : vector<8x1xf32>
    %96 = vector.broadcast %95 : vector<8x1xf32> to vector<8x32xf32>
    %97 = arith.mulf %92, %96 : vector<8x32xf32>
    %c0_49 = arith.constant 0 : index
    %c0_50 = arith.constant 0 : index
    %98 = vector.load %arg13[%c0_49, %c0_50] : memref<1x32xf32, #tpu.memory_space<vmem>>, vector<1x32xf32>
    %99 = vector.broadcast %98 : vector<1x32xf32> to vector<8x32xf32>
    %100 = arith.mulf %97, %99 : vector<8x32xf32>
    %c0_51 = arith.constant 0 : index
    %c0_52 = arith.constant 0 : index
    %101 = vector.load %arg14[%c0_51, %c0_52] : memref<1x32xf32, #tpu.memory_space<vmem>>, vector<1x32xf32>
    %102 = vector.broadcast %101 : vector<1x32xf32> to vector<8x32xf32>
    %103 = arith.addf %100, %102 : vector<8x32xf32>
    %c0_53 = arith.constant 0 : index
    %c0_54 = arith.constant 0 : index
    %c0_55 = arith.constant 0 : index
    %104 = vector.load %arg15[%c0_53, %c0_54, %c0_55] : memref<1x8x32xf32, #tpu.memory_space<vmem>>, vector<1x8x32xf32>
    %105 = vector.shape_cast %104 : vector<1x8x32xf32> to vector<8x32xf32>
    %106 = vector.shape_cast %103 : vector<8x32xf32> to vector<1x8x32xf32>
    tpu.vector_store %arg15[%c0_53, %c0_54, %c0_55], %106 {strides = array<i32>} : memref<1x8x32xf32, #tpu.memory_space<vmem>>, vector<1x8x32xf32>,
    return
  }
  func.func @transform_0(%arg0: i32) -> (i32, i32, i32) {
    %c0_i32 = arith.constant 0 : i32
    %c0_i32_0 = arith.constant 0 : i32
    %c0_i32_1 = arith.constant 0 : i32
    return %arg0, %c0_i32, %c0_i32_0 : i32, i32, i32
  }
  func.func @transform_1(%arg0: i32) -> (i32, i32, i32) {
    %c0_i32 = arith.constant 0 : i32
    %c0_i32_0 = arith.constant 0 : i32
    %c0_i32_1 = arith.constant 0 : i32
    return %arg0, %c0_i32, %c0_i32_0 : i32, i32, i32
  }
  func.func @transform_2(%arg0: i32) -> (i32, i32) {
    %c0_i32 = arith.constant 0 : i32
    %c0_i32_0 = arith.constant 0 : i32
    %c0_i32_1 = arith.constant 0 : i32
    return %c0_i32, %c0_i32_0 : i32, i32
  }
  func.func @transform_3(%arg0: i32) -> (i32, i32) {
    %c0_i32 = arith.constant 0 : i32
    %c0_i32_0 = arith.constant 0 : i32
    %c0_i32_1 = arith.constant 0 : i32
    return %c0_i32, %c0_i32_0 : i32, i32
  }
  func.func @transform_4(%arg0: i32) -> (i32, i32) {
    %c0_i32 = arith.constant 0 : i32
    %c0_i32_0 = arith.constant 0 : i32
    %c0_i32_1 = arith.constant 0 : i32
    return %c0_i32, %c0_i32_0 : i32, i32
  }
  func.func @transform_5(%arg0: i32) -> (i32, i32) {
    %c0_i32 = arith.constant 0 : i32
    %c0_i32_0 = arith.constant 0 : i32
    %c0_i32_1 = arith.constant 0 : i32
    return %c0_i32, %c0_i32_0 : i32, i32
  }
  func.func @transform_6(%arg0: i32) -> (i32, i32) {
    %c0_i32 = arith.constant 0 : i32
    %c0_i32_0 = arith.constant 0 : i32
    %c0_i32_1 = arith.constant 0 : i32
    return %c0_i32, %c0_i32_0 : i32, i32
  }
  func.func @transform_7(%arg0: i32) -> (i32, i32) {
    %c0_i32 = arith.constant 0 : i32
    %c0_i32_0 = arith.constant 0 : i32
    %c0_i32_1 = arith.constant 0 : i32
    return %c0_i32, %c0_i32_0 : i32, i32
  }
  func.func @transform_8(%arg0: i32) -> (i32, i32) {
    %c0_i32 = arith.constant 0 : i32
    %c0_i32_0 = arith.constant 0 : i32
    %c0_i32_1 = arith.constant 0 : i32
    return %c0_i32, %c0_i32_0 : i32, i32
  }
  func.func @transform_9(%arg0: i32) -> (i32, i32) {
    %c0_i32 = arith.constant 0 : i32
    %c0_i32_0 = arith.constant 0 : i32
    %c0_i32_1 = arith.constant 0 : i32
    return %c0_i32, %c0_i32_0 : i32, i32
  }
  func.func @transform_10(%arg0: i32) -> (i32, i32) {
    %c0_i32 = arith.constant 0 : i32
    %c0_i32_0 = arith.constant 0 : i32
    %c0_i32_1 = arith.constant 0 : i32
    return %c0_i32, %c0_i32_0 : i32, i32
  }
  func.func @transform_11(%arg0: i32) -> (i32, i32) {
    %c0_i32 = arith.constant 0 : i32
    %c0_i32_0 = arith.constant 0 : i32
    %c0_i32_1 = arith.constant 0 : i32
    return %c0_i32, %c0_i32_0 : i32, i32
  }
  func.func @transform_12(%arg0: i32) -> (i32, i32) {
    %c0_i32 = arith.constant 0 : i32
    %c0_i32_0 = arith.constant 0 : i32
    %c0_i32_1 = arith.constant 0 : i32
    return %c0_i32, %c0_i32_0 : i32, i32
  }
  func.func @transform_13(%arg0: i32) -> (i32, i32) {
    %c0_i32 = arith.constant 0 : i32
    %c0_i32_0 = arith.constant 0 : i32
    %c0_i32_1 = arith.constant 0 : i32
    return %c0_i32, %c0_i32_0 : i32, i32
  }
  func.func @transform_14(%arg0: i32) -> (i32, i32, i32) {
    %c0_i32 = arith.constant 0 : i32
    %c0_i32_0 = arith.constant 0 : i32
    %c0_i32_1 = arith.constant 0 : i32
    return %arg0, %c0_i32, %c0_i32_0 : i32, i32, i32
  }
  func.func @transform_15(%arg0: i32) -> (i32, i32, i32, i32) {
    %c0_i32 = arith.constant 0 : i32
    %c0_i32_0 = arith.constant 0 : i32
    %c0_i32_1 = arith.constant 0 : i32
    %c0_i32_2 = arith.constant 0 : i32
    return %arg0, %c0_i32, %c0_i32_0, %c0_i32_1 : i32, i32, i32, i32
  }
}

</mosaic_0001>

<bundles_post_ra>
// kernel: tpu_custom_call.1
= control target key start
LH: loop header
LB: loop body
LE: loop exit
PB: predicated region body
PF: predicated region fallthrough
CT: control target
= control target key end

     0   :  { %s3466_s0 = inlined_call_operand.hbm [shape: f32[2,8,32], index: 0, kind: input, shape index: {}]   ;;  %s3467_s1 = inlined_call_operand.hbm [shape: f32[2,8,8], index: 1, kind: input, shape index: {}]   ;;  %s3468_s2 = inlined_call_operand.vmem [shape: f32[32,96], index: 2, kind: input, shape index: {}]   ;;  %s3469_s3 = inlined_call_operand.vmem [shape: f32[1,96], index: 3, kind: input, shape index: {}]   ;;  %s3470_s4 = inlined_call_operand.vmem [shape: f32[32,32], index: 4, kind: input, shape index: {}]   ;;  %s3471_s5 = inlined_call_operand.vmem [shape: f32[1,32], index: 5, kind: input, shape index: {}]   ;;  %s3472_s6 = inlined_call_operand.vmem [shape: f32[1,32], index: 6, kind: input, shape index: {}]   ;;  %s3473_s7 = inlined_call_operand.vmem [shape: f32[1,32], index: 7, kind: input, shape index: {}]   ;;  %s3474_s8 = inlined_call_operand.vmem [shape: f32[32,64], index: 8, kind: input, shape index: {}]   ;;  %s3475_s9 = inlined_call_operand.vmem [shape: f32[1,64], index: 9, kind: input, shape index: {}]   ;;  %s3476_s10 = inlined_call_operand.vmem [shape: f32[64,32], index: 10, kind: input, shape index: {}]   ;;  %s3477_s11 = inlined_call_operand.vmem [shape: f32[1,32], index: 11, kind: input, shape index: {}]   ;;  %s3478_s12 = inlined_call_operand.vmem [shape: f32[1,32], index: 12, kind: input, shape index: {}]   ;;  %s3479_s13 = inlined_call_operand.vmem [shape: f32[1,32], index: 13, kind: input, shape index: {}]   ;;  %s3480_s14 = inlined_call_operand.hbm [shape: f32[2,8,32], index: 14, kind: output, shape index: {0}]   ;;  %s3481_s15 = inlined_call_operand.hbm [shape: f32[2,4,8,8], index: 15, kind: output, shape index: {1}]  }
   0x1   :  { %3493 = sst [smem:[#allocation20_spill]] %s3466_s0 }
   0x2   :  { %3494 = sst [smem:[#allocation21_spill]] %s3479_s13 }
   0x3   :  { %3495 = sst [smem:[#allocation22_spill]] %s3480_s14 }
   0x4   :  { %21 = vsyncpa [#allocation3], 0 }
   0x5   :  { %23 = vsyncpa [#allocation3 + $0x1], 0 }
   0x6   :  { %24 = vsyncpa [#allocation6], 0 }
   0x7   :  { %26 = vsyncpa [#allocation6 + $0x1], 0 }
   0x8   :  { %27 = vsyncpa [#allocation4], 0 }
   0x9   :  { %29 = vsyncpa [#allocation4 + $0x1], 0 }
   0xa   :  { %30 = vsyncpa [#allocation9], 0 }
   0xb   :  { %32 = vsyncpa [#allocation9 + $0x1], 0  ;;  %s2962_s18 = smov 0   ;;  %s2964_s19 = smov 0  }
   0xc   :  { %s2966_s20 = smov 0   ;;  %s2968_s21 = smov 0  }
   0xd LB: > { %3496 = sst [smem:[#allocation14_spill]] %s2844_s18  ;;  %s2983_s22 = sadd.s32 4294967295, %s2856_s21   ;;  %s2856_s21 = sphi %s2968_s21, %s3524_s21   ;;  %s2852_s20 = sphi %s2966_s20, %s3526_s20   ;;  %s2848_s19 = sphi %s2964_s19, %s3528_s19   ;;  %s2844_s18 = sphi %s2962_s18, %s3527_s18  }
   0xe   : > { %3497 = sst [smem:[#allocation15_spill]] %s2852_s20  ;;  %s2380_s23 = sadd.s32 4294967294, %s2856_s21  }
   0xf   : > { %3498 = sst [smem:[#allocation16_spill]] %s2856_s21  ;;  %s2987_s24 = sadd.s32 1, %s2856_s21  }
  0x10   : > { %3499 = sst [smem:[#allocation17_spill]] %s2987_s24  ;;  %s45_s25 = sadd.s32 1, %s2852_s20 }
  0x11   : > { %s42_s26 = ssub.s32 %s2856_s21, %s2987_s24  ;;  %p52_p0 = scmp.ne.s32.totalorder %s2852_s20, %s2848_s19 }
  0x12   : > { %p43_p1 = scmp.eq.s32.totalorder %s42_s26, 0  ;;  %p53_p2 = scmp.eq.s32.totalorder %s2856_s21, 0 }
  0x13   : > { %p58_p3 = scmp.ne.s32.totalorder %s2848_s19, %s2844_s18  ;;  %p59_p4 = scmp.eq.s32.totalorder %s2983_s22, 0 }
  0x14   : > { %s2999_s27 = scalar_select %p43_p1, %s2852_s20, %s45_s25  }
  0x15   : > { %p3001_p5 = por %p53_p2, %p52_p0  ;;  %p3005_p6 = por %p59_p4, %p58_p3 }
  0x16   : > { %3500 = sst [smem:[#allocation18_spill]] %s2999_s27  ;;  %p360_p7 = scmp.eq.s32.totalorder %s2983_s22, 1 }
  0x17   : > { %s3502_s29 = scalar_select %p3005_p6, 1, 0 }
  0x18   : > { %p366_p8 = scmp.eq.s32.totalorder %s2380_s23, 1  ;;  %p2620_p10 = scmp.lt.s32.totalorder %s2856_s21, 2 }
  0x19   : > { %p3012_p11 = por %p360_p7, %p52_p0  ;;  %s3021_s17 = sand.u32 1, %s2852_s20  }
  0x1a   : > { %p3016_p12 = por %p366_p8, %p58_p3  ;;  %s3488_s25 = sshll.u32 %s2856_s21, 7 }
  0x1b   : > { %s3503_s30 = scalar_select %p3012_p11, 1, 0 }
  0x1c   : > { %s3504_s16 = scalar_select %p3016_p12, 1, 0 }
  0x1d   : > { %s3487_s26 = sshll.u32 %s3021_s17, 3  ;;  %s3506_s0 = sld [smem:[#allocation20_spill]] }
  0x1e   : > { %3505 = sst [smem:[#allocation19_spill]] %s3504_s16  ;;  %s452_s18 = scalar_lea.vmem [#allocation2], %s3487_s26 }
  0x1f   : > { %s459_s16 = sshll.u32 %s452_s18, 4  ;;  %p3036_p13 = pnand %p2620_p10, %p3001_p5  ;;  %s3040_s16 = int_to_ptr.vmem [resolvable:$true] %s459_s16 }
  0x20   : > { %s449_s27 = scalar_lea.sflag [#allocation3], %s3021_s17 }
  0x21   : > { %p2696_p3 = pneg %p3036_p13 }
  0x23   : > { %s3030_s24 = scalar_lea.hbm %s3506_s0, %s3488_s25  ;;  %s2699_s26 = scalar_lea.hbm %s3506_s0, 256 }
  0x24   : > { %s2694_s23 = scalar_lea.hbm %s3030_s24, 128  ;;  %p2700_p5 = scmp.lt.u32.totalorder %s3030_s24, %s3506_s0 }
  0x25   : > { %p2695_p2 = scmp.ne.s32.totalorder %s3030_s24, %s2694_s23  ;;  %p2701_p8 = scmp.lt.u32.totalorder %s2699_s26, %s2694_s23 }
  0x26   : > { %p2703_p9 = scmp.lt.u32.totalorder %s2694_s23, %s3030_s24 }
  0x27   : > { %p2697_p4 = pnand %p2696_p3, %p2695_p2  ;;  %p2702_p10 = por %p2701_p8, %p2700_p5 }
  0x29   : > { %p2698_p7 = pneg %p2697_p4  ;;  %p2704_p0 = por %p2703_p9, %p2702_p10 }
  0x2b   : > { %p2705_p1 = pnand %p2704_p0, %p2698_p7 }
  0x2d   : > { %2708 = shalt.err (!%p2705_p1)
}
  0x2e   : > { %s2709_s13 = scalar_lea.vmem %s3040_s16, 128  ;;  %s2858_s18 = smov [#allocation2]  }
  0x2f   : > { %p2710_p2 = scmp.ne.s32.totalorder %s3040_s16, %s2709_s13  ;;  %s2714_s28 = sshll.u32 %s2858_s18, 4  ;;  %s2715_s28 = int_to_ptr.vmem [resolvable:$false] %s2714_s28 }
  0x30   : > { %s2716_s14 = scalar_lea.vmem %s2715_s28, 256  ;;  %p2717_p11 = scmp.lt.s32.totalorder %s3040_s16, %s2715_s28 }
  0x31   : > { %p2712_p4 = pnand %p2710_p2, %p2696_p3  ;;  %p2718_p5 = scmp.lt.s32.totalorder %s2716_s14, %s2709_s13 }
  0x33   : > { %p2713_p12 = pneg %p2712_p4  ;;  %p2719_p8 = por %p2718_p5, %p2717_p11 }
  0x35   : > { %p2720_p9 = pnand %p2719_p8, %p2713_p12 }
  0x37   : > { %2723 = shalt.err (!%p2720_p9)
}
  0x38   : > { %2609 = dma.hbm_to_vmem [thread:$0]  (!%p3036_p13), %s3030_s24, 128, %s3040_s16, %s449_s27  }
  0x39   : > { %p3508_p0 = scmp.lt.s32.totalorder %s2856_s21, 3  ;;  %p3509_p1 = scmp.ge.s32.totalorder %s2856_s21, 1 }
  0x3a   : > { %s3511_s13 = sshll.u32 %s2856_s21, 7  ;;  %s3512_s28 = sshll.u32 %s3021_s17, 3 }
  0x3b   : > { %p3074_p7 = pnand %p3509_p1, %p3508_p0  ;;  %s3083_s18 = scalar_lea.hbm %s3467_s1, %s3511_s13 }
  0x3c   : > { %s470_s14 = scalar_lea.vmem [#allocation5], %s3512_s28  ;;  %s467_s24 = scalar_lea.sflag [#allocation6], %s3021_s17 }
  0x3d   : > { %s3510_s25 = scalar_select %p3074_p7, 1, 0 }
  0x3e   : > { %s477_s0 = sshll.u32 %s470_s14, 4  ;;  %s2724_s16 = scalar_lea.hbm %s3083_s18, 128  ;;  %s478_s0 = int_to_ptr.vmem [resolvable:$true] %s477_s0 }
  0x3f   : > { %p2725_p11 = scmp.ne.s32.totalorder %s3083_s18, %s2724_s16  ;;  %s2729_s13 = scalar_lea.hbm %s3467_s1, 256 }
  0x40   : > { %p2730_p2 = scmp.lt.u32.totalorder %s3083_s18, %s3467_s1  ;;  %p2731_p4 = scmp.lt.u32.totalorder %s2729_s13, %s2724_s16 }
  0x41   : > { %p2727_p12 = pnand %p2725_p11, %p2696_p3  ;;  %p2733_p8 = scmp.lt.u32.totalorder %s2724_s16, %s3083_s18 }
  0x42   : > { %p2732_p5 = por %p2731_p4, %p2730_p2 }
  0x43   : > { %p2728_p10 = pneg %p2727_p12 }
  0x44   : > { %p2734_p9 = por %p2733_p8, %p2732_p5 }
  0x46   : > { %p2735_p0 = pnand %p2734_p9, %p2728_p10 }
  0x48   : > { %2738 = shalt.err (!%p2735_p0)
}
  0x49   : > { %s2739_s17 = scalar_lea.vmem %s478_s0, 128  ;;  %s2859_s28 = smov [#allocation5]  }
  0x4a   : > { %p2740_p1 = scmp.ne.s32.totalorder %s478_s0, %s2739_s17  ;;  %s2744_s21 = sshll.u32 %s2859_s28, 4  ;;  %s2745_s21 = int_to_ptr.vmem [resolvable:$false] %s2744_s21 }
  0x4b   : > { %s2746_s14 = scalar_lea.vmem %s2745_s21, 256  ;;  %p2747_p6 = scmp.lt.s32.totalorder %s478_s0, %s2745_s21 }
  0x4c   : > { %p2742_p11 = pnand %p2740_p1, %p2696_p3  ;;  %p2748_p7 = scmp.lt.s32.totalorder %s2746_s14, %s2739_s17 }
  0x4e   : > { %p2743_p12 = pneg %p2742_p11  ;;  %p2749_p2 = por %p2748_p7, %p2747_p6 }
  0x50   : > { %p2750_p4 = pnand %p2749_p2, %p2743_p12 }
  0x52   : > { %2753 = shalt.err (!%p2750_p4)
}
  0x53   : > { %2612 = dma.hbm_to_vmem [thread:$0]  (!%p3036_p13), %s3083_s18, 128, %s478_s0, %s467_s24  }
  0x54   : > { %p3513_p10 = scmp.ne.s32.totalorder %s3510_s25, 0 }
  0x55   : > { %s3110_s16 = sand.u32 (!%p3513_p10), 1, %s2848_s19   ;;  %p3514_p6 = scmp.ne.s32.totalorder (!%p3513_p10), %s3502_s29, 0 }
  0x56   : > { %486 = sbr.rel (%p3513_p10) target bundleno = 2370 (0x942), region = 76  ;;  %s3113_s27 = sshll.u32 (!%p3513_p10), %s3110_s16, 3 }
  0x57   : > { %s489_s13 = scalar_lea.sflag (!%p3513_p10), [#allocation3], %s3110_s16  ;;  %s492_s26 = scalar_lea.vmem (!%p3513_p10), [#allocation2], %s3113_s27 }
  0x5d   : > { %2827 = dma.done.wait (%p3514_p6), %s489_s13, 128  }
  0x5e   : > { %2829 = vsyncadd (%p3514_p6), %s489_s13, 4294967168  ;;  %s498_s0 = scalar_lea.sflag [#allocation6], %s3110_s16  ;;  %s501_s20 = scalar_lea.vmem [#allocation5], %s3113_s27 }
  0x5f   : > { %2831 = dma.done.wait (%p3514_p6), %s498_s0, 128  }
  0x60   : > { %2833 = vsyncadd (%p3514_p6), %s498_s0, 4294967168  ;;  %v2860_v0 = vmov 0.0|0.0   ;;  %vm2861_vm0 = vmmov 0   ;;  %v2862_v1 = vmov 0.0   ;;  %v560_v2 = vld [vmem:[%s3468_s2] sm:$0xff]  ;;  %v561_v3 = vld [vmem:[%s3468_s2 + $0x8] sm:$0xff]  ;;  %v684_v15 = vlaneseq }
  0x61   : > { %2568 = vmatprep.subr.bf16.mxu1 %v2860_v0  ;;  %2484 = vmatprep.mubr.msk.f32.mxu1 %vm2861_vm0, %v2862_v1  ;;  %v562_v4 = vld [vmem:[%s3468_s2 + $0x10] sm:$0xff]  ;;  %v2569_v5 = vpack.c.bf16 %v561_v3, %v560_v2  ;;  %v563_v6 = vld [vmem:[%s3468_s2 + $0x18] sm:$0xff]  ;;  %v3146_v8 = vld [vmem:[%s492_s26] sm:$0xff]  ;;  %vm571_vm1 = vcmask 261120   ;;  %s2863_s0 = smov 80   ;;  %s2864_s26 = smov 96  }
  0x62   : > { %2497 = vmatprep.subr.mxu0 %v2862_v1  ;;  %2499 = vmatprep.mubr.msk.f32.mxu0 %vm2861_vm0, %v2862_v1  ;;  %v2572_v7 = vpack.c.bf16 %v563_v6, %v562_v4  ;;  %v2392_v9 = vld [vmem:[%s3469_s3] ss:$0 sm:$0xff]  ;;  %s2865_s25 = smov 72   ;;  %s2866_s18 = smov 88   ;;  %v2870_v13 = vmov 1983009808  }
  0x63   : > { %2570 = vmatpush3.bf16.msra.mxu1 %v2569_v5  ;;  %s2867_s24 = smov 112   ;;  %s2868_s29 = smov 120   ;;  %v682_v14 = vunpack.c.l.s4 %v2870_v13  ;;  %v2871_v16 = vmov 1934713408   ;;  %v685_v19 = vshrl.u32 %v684_v15, 7  ;;  %vm1087_vm2 = vcmask 64512  }
  0x64   : > { %2571 = vmatprep.subr.bf16.mxu1 %v2860_v0  ;;  %s2869_s23 = smov 104   ;;  %v746_v17 = vunpack.c.l.s4 %v2871_v16  ;;  %s2873_s17 = smov 64   ;;  %vm1893_vm3 = vcmask 130048   ;;  %vm1895_vm4 = vcmask 195584   ;;  %vm2113_vm5 = vcmask 523264  }
  0x65   : > { %v683_v18 = vunpack.c.0.s8 %v682_v14  ;;  %s2874_s28 = smov 48   ;;  %s2875_s21 = smov 40  }
  0x66   : > { %v747_v22 = vunpack.c.0.s8 %v746_v17  ;;  %s2391_s14 = sshll.u32 %s3110_s16, 5  ;;  %p3515_p3 = scmp.ne.s32.totalorder %s3503_s30, 0 }
  0x67   : > { %2573 = vmatpush3.bf16.msra.mxu1 %v2572_v7  ;;  %v3165_v23 = vsub.s32 %v683_v18, %v685_v19  ;;  %s3238_s13 = scalar_lea.vmem [#allocation8], %s2391_s14 }
  0x68   : > { %2487 = vmatprep.subr.mxu1 %v2862_v1  ;;  %v3167_v30 = vsub.s32 %v747_v22, %v685_v19 }
  0x6a   : > { %2485 = vmatmul.mubr.msk.f32.vlgmr.msra.gmra.mrb[0].mxu1 %vm571_vm1, %v3146_v8 }
  0x6b   : > { %2489 = vmatprep.mubr.msk.f32.mxu1 %vm2861_vm0, %v2862_v1 }
 0x13d   : > { %v641_v10 = vpop.f32.mrb[0].mxu1 }
 0x13e   : > { %v3156_v11 = vadd.f32 %v2392_v9, %v641_v10  ;;  %v2486_v12 = vpop.f32.mrb[1].mxu1 }
 0x140   : > { %661 = vrot.lane.b32.xlu1 %v3156_v11, %s2863_s0  ;;  %655 = vrot.lane.b32.xlu0 %v3156_v11, %s2864_s26  ;;  %s2435_s0 = sshll.u32 %s2983_s22, 9  ;;  %s2252_s26 = sshll.u32 %s3238_s13, 4  ;;  %s3383_s26 = int_to_ptr.vmem [resolvable:$true] %s2252_s26 }
 0x144   : > { %664 = vrot.lane.b32.xlu1 %v3156_v11, %s2865_s25  ;;  %658 = vrot.lane.b32.xlu0 %v3156_v11, %s2866_s18 }
 0x148   : > { %649 = vrot.lane.b32.xlu1 %v3156_v11, %s2867_s24  ;;  %646 = vrot.lane.b32.xlu0 %v3156_v11, %s2868_s29  ;;  %s3381_s24 = scalar_lea.hbm %s3481_s15, %s2435_s0  ;;  %s2226_s29 = scalar_lea.sflag [#allocation9], %s3110_s16 }
 0x14c   : > { %652 = vrot.lane.b32.xlu0 %v3156_v11, %s2869_s23  ;;  %s2754_s23 = scalar_lea.vmem %s3383_s26, 512 }
 0x14d   : > { %p2755_p13 = scmp.ne.s32.totalorder %s3383_s26, %s2754_s23 }
 0x14f   : > { %p2756_p7 = pnand %p2755_p13, %p3515_p3 }
 0x151   : > { %p2757_p5 = pneg %p2756_p7 }
 0x1b2   : > { %v662_v20 = vpop.permute.xlu1 %661  ;;  %v656_v21 = vpop.permute.xlu0 %655 }
 0x1b3   : > { %v711_v24 = vcombine.low %v656_v21, %v662_v20  ;;  %v712_v25 = vcombine.high %v656_v21, %v662_v20 }
 0x1b5   : > { %v719_v31 = vrot.slane %v711_v24, %v3165_v23  ;;  %v726_v32 = vrot.slane %v712_v25, %v3165_v23 }
 0x1b6   : > { %v665_v26 = vpop.permute.xlu1 %664  ;;  %v659_v27 = vpop.permute.xlu0 %658 }
 0x1b7   : > { %v727_v28 = vcombine.low %v659_v27, %v665_v26  ;;  %v728_v29 = vcombine.high %v659_v27, %v665_v26 }
 0x1b9   : > { %v735_v33 = vrot.slane %v727_v28, %v3165_v23  ;;  %v742_v34 = vrot.slane %v728_v29, %v3165_v23 }
 0x1ba   : > { %v647_v35 = vpop.permute.xlu0 %646  ;;  %v650_v40 = vpop.permute.xlu1 %649 }
 0x1bb   : > { %v775_v36 = vcombine.low %v719_v31, %v735_v33  ;;  %v776_v37 = vcombine.high %v719_v31, %v735_v33  ;;  %v791_v38 = vcombine.low %v726_v32, %v742_v34  ;;  %v792_v39 = vcombine.high %v726_v32, %v742_v34 }
 0x1bc   : > { %v679_v45 = vcombine.low %v3156_v11, %v650_v40  ;;  %v680_v46 = vcombine.high %v3156_v11, %v650_v40 }
 0x1bd   : > { %v783_v41 = vrot.slane %v775_v36, %v3167_v30  ;;  %v790_v42 = vrot.slane %v776_v37, %v3167_v30  ;;  %v799_v43 = vrot.slane %v791_v38, %v3167_v30  ;;  %v806_v44 = vrot.slane %v792_v39, %v3167_v30 }
 0x1be   : > { %v653_v47 = vpop.permute.xlu0 %652  ;;  %v687_v58 = vrot.slane %v679_v45, %v3165_v23  ;;  %v694_v59 = vrot.slane %v680_v46, %v3165_v23  ;;  %v559_v46 = vld [vmem:[%s501_s20] sm:$0xff]  ;;  %s2872_s20 = smov 56  }
 0x1bf   : > { %v2395_v48 = vcombine.low %v783_v41, %v790_v42  ;;  %v2397_v49 = vcombine.high %v783_v41, %v790_v42  ;;  %v2399_v50 = vcombine.low %v799_v43, %v806_v44  ;;  %v2401_v51 = vcombine.high %v799_v43, %v806_v44 }
 0x1c0   : > { %v695_v52 = vcombine.low %v647_v35, %v653_v47  ;;  %v696_v53 = vcombine.high %v647_v35, %v653_v47 }
 0x1c1   : > { %v898_v54 = vrot.slane %v2395_v48, %v3165_v23  ;;  %v914_v55 = vrot.slane %v2397_v49, %v3165_v23  ;;  %v930_v56 = vrot.slane %v2399_v50, %v3165_v23  ;;  %v946_v57 = vrot.slane %v2401_v51, %v3165_v23 }
 0x1c2   : > { %v703_v60 = vrot.slane %v695_v52, %v3165_v23  ;;  %v710_v61 = vrot.slane %v696_v53, %v3165_v23 }
 0x1c3   : > { %v963_v62 = vcombine.low %v898_v54, %v914_v55  ;;  %v995_v63 = vcombine.low %v930_v56, %v946_v57  ;;  %v964_v2 = vcombine.high %v898_v54, %v914_v55  ;;  %v996_v3 = vcombine.high %v930_v56, %v946_v57 }
 0x1c4   : > { %v743_v4 = vcombine.low %v687_v58, %v703_v60  ;;  %v744_v5 = vcombine.high %v687_v58, %v703_v60  ;;  %v759_v6 = vcombine.low %v694_v59, %v710_v61  ;;  %v760_v7 = vcombine.high %v694_v59, %v710_v61 }
 0x1c5   : > { %v971_v9 = vrot.slane %v963_v62, %v3167_v30  ;;  %v1003_v10 = vrot.slane %v995_v63, %v3167_v30  ;;  %v978_v12 = vrot.slane %v964_v2, %v3167_v30  ;;  %v1010_v13 = vrot.slane %v996_v3, %v3167_v30 }
 0x1c6   : > { %v751_v14 = vrot.slane %v743_v4, %v3167_v30  ;;  %v758_v15 = vrot.slane %v744_v5, %v3167_v30  ;;  %v767_v16 = vrot.slane %v759_v6, %v3167_v30  ;;  %v774_v17 = vrot.slane %v760_v7, %v3167_v30 }
 0x1c7   : > { %v1015_v18 = vcombine.low %v971_v9, %v1003_v10  ;;  %v1017_v19 = vcombine.low %v978_v12, %v1010_v13  ;;  %v1016_v40 = vcombine.high %v971_v9, %v1003_v10  ;;  %v1018_v42 = vcombine.high %v978_v12, %v1010_v13 }
 0x1c8   : > { %v2394_v20 = vcombine.low %v751_v14, %v758_v15  ;;  %v2396_v21 = vcombine.high %v751_v14, %v758_v15  ;;  %v2398_v22 = vcombine.low %v767_v16, %v774_v17  ;;  %v2400_v24 = vcombine.high %v767_v16, %v774_v17 }
 0x1c9   : > { %2488 = vmatpush3.xpose.msk.msra.mxu1 %vm1087_vm2, %v1015_v18  ;;  %2498 = vmatpush3.xpose.msk.msra.mxu0 %vm1087_vm2, %v1017_v19 }
 0x1ca   : > { %v891_v25 = vrot.slane %v2394_v20, %v3165_v23  ;;  %v907_v26 = vrot.slane %v2396_v21, %v3165_v23  ;;  %v923_v27 = vrot.slane %v2398_v22, %v3165_v23  ;;  %v939_v28 = vrot.slane %v2400_v24, %v3165_v23  ;;  %2492 = vmatprep.subr.mxu1 %v2862_v1 }
 0x1cb   : > { %2507 = vmatprep.subr.mxu0 %v2862_v1 }
 0x1cc   : > { %v947_v29 = vcombine.low %v891_v25, %v907_v26  ;;  %v979_v31 = vcombine.low %v923_v27, %v939_v28  ;;  %v948_v32 = vcombine.high %v891_v25, %v907_v26  ;;  %v980_v33 = vcombine.high %v923_v27, %v939_v28 }
 0x1ce   : > { %v955_v34 = vrot.slane %v947_v29, %v3167_v30  ;;  %v987_v35 = vrot.slane %v979_v31, %v3167_v30  ;;  %v962_v36 = vrot.slane %v948_v32, %v3167_v30  ;;  %v994_v37 = vrot.slane %v980_v33, %v3167_v30 }
 0x1d0   : > { %v1011_v38 = vcombine.low %v955_v34, %v987_v35  ;;  %v1013_v39 = vcombine.low %v962_v36, %v994_v37  ;;  %v1012_v41 = vcombine.high %v955_v34, %v987_v35  ;;  %v1014_v43 = vcombine.high %v962_v36, %v994_v37 }
 0x1d2   : > { %2490 = vmatmul.mubr.msk.f32.vlgmr.msra.gmra.mrb[2].mxu1 %vm1087_vm2, %v1011_v38  ;;  %2500 = vmatmul.mubr.msk.f32.vlgmr.msra.gmra.mrb[0].mxu0 %vm1087_vm2, %v1013_v39 }
 0x1d3   : > { %2493 = vmatpush3.xpose.msk.msra.mxu1 %vm1087_vm2, %v1016_v40  ;;  %2494 = vmatprep.mubr.msk.f32.mxu1 %vm2861_vm0, %v2862_v1 }
 0x1d4   : > { %2502 = vmatprep.subr.mxu1 %v2862_v1  ;;  %2509 = vmatprep.mubr.msk.f32.mxu0 %vm2861_vm0, %v2862_v1 }
 0x1d6   : > { %2495 = vmatmul.mubr.msk.f32.vlgmr.msra.gmra.mrb[4].mxu1 %vm1087_vm2, %v1012_v41 }
 0x1d7   : > { %2503 = vmatpush3.xpose.msk.msra.mxu1 %vm1087_vm2, %v1018_v42  ;;  %2504 = vmatprep.mubr.msk.f32.mxu1 %vm2861_vm0, %v2862_v1 }
 0x1d8   : > { %2512 = vmatprep.subr.mxu1 %v2862_v1 }
 0x1da   : > { %2505 = vmatmul.mubr.msk.f32.vlgmr.msra.gmra.mrb[6].mxu1 %vm1087_vm2, %v1014_v43 }
 0x1db   : > { %2514 = vmatprep.mubr.msk.f32.mxu1 %vm2861_vm0, %v2862_v1 }
 0x2a5   : > { %v1160_v44 = vpop.f32.mrb[2].mxu1  ;;  %v1312_v45 = vpop.f32.mrb[0].mxu0 }
 0x2a6   : > { %v1392_v47 = vmul.f32 0.35355338, %v1160_v44  ;;  %v2491_v48 = vpop.f32.mrb[3].mxu1  ;;  %v2501_v49 = vpop.f32.mrb[1].mxu0  ;;  %v1394_v52 = vmul.f32 0.35355338, %v1312_v45 }
 0x2a8   : > { %v1396_v50 = vadd.f32 %v1392_v47, %v559_v46  ;;  %v1398_v61 = vadd.f32 %v1394_v52, %v559_v46 }
 0x2a9   : > { %v1236_v51 = vpop.f32.mrb[4].mxu1 }
 0x2aa   : > { %v1393_v53 = vmul.f32 0.35355338, %v1236_v51  ;;  %v2496_v54 = vpop.f32.mrb[5].mxu1  ;;  %v1400_v55 = vsel %vm1087_vm2, %v1396_v50, -inf  ;;  %v1406_v63 = vsel %vm1087_vm2, %v1398_v61, -inf }
 0x2ab   : > { %1401 = vmax.xlane.f32.xlu1 %v1400_v55 }
 0x2ac   : > { %v1397_v56 = vadd.f32 %v1393_v53, %v559_v46 }
 0x2ad   : > { %v1388_v57 = vpop.f32.mrb[6].mxu1 }
 0x2ae   : > { %v1395_v58 = vmul.f32 0.35355338, %v1388_v57  ;;  %v2506_v59 = vpop.f32.mrb[7].mxu1  ;;  %v1403_v60 = vsel %vm1087_vm2, %v1397_v56, -inf }
 0x2af   : > { %1404 = vmax.xlane.f32.xlu0 %v1403_v60 }
 0x2b0   : > { %v1399_v62 = vadd.f32 %v1395_v58, %v559_v46 }
 0x2b2   : > { %v1409_v2 = vsel %vm1087_vm2, %v1399_v62, -inf }
 0x2b3   : > { %1407 = vmax.xlane.f32.xlu0 %v1406_v63  ;;  %1410 = vmax.xlane.f32.xlu1 %v1409_v2 }
 0x2c4   : > { %670 = vrot.lane.b32.xlu1 %v3156_v11, %s2872_s20  ;;  %s2879_s20 = smov [#allocation8]  }
 0x2c9   : > { %667 = vrot.lane.b32.xlu0 %v3156_v11, %s2873_s17  ;;  %s2876_s17 = smov 16  }
 0x338   : > { %v1402_v3 = vpop.xlane.xlu1 %1401 }
 0x339   : > { %v1412_v4 = vsub.f32 %v1396_v50, %v1402_v3 }
 0x33b   : > { %v1416_v5 = vmul.f32 1.442695, %v1412_v4 }
 0x33c   : > { %v1405_v6 = vpop.xlane.xlu0 %1404 }
 0x33d   : > { %2674 = vpow2.f32 %v1416_v5  ;;  %v1413_v7 = vsub.f32 %v1397_v56, %v1405_v6 }
 0x33f   : > { %v1418_v9 = vmul.f32 1.442695, %v1413_v7 }
 0x340   : > { %v1408_v10 = vpop.xlane.xlu0 %1407  ;;  %v1411_v12 = vpop.xlane.xlu1 %1410 }
 0x341   : > { %2676 = vpow2.f32 %v1418_v9  ;;  %v1414_v13 = vsub.f32 %v1398_v61, %v1408_v10  ;;  %v1415_v14 = vsub.f32 %v1399_v62, %v1411_v12 }
 0x343   : > { %v1420_v15 = vmul.f32 1.442695, %v1414_v13  ;;  %v1422_v16 = vmul.f32 1.442695, %v1415_v14 }
 0x344   : > { %v668_v26 = vpop.permute.xlu0 %667  ;;  %v671_v27 = vpop.permute.xlu1 %670 }
 0x345   : > { %2678 = vpow2.f32 %v1420_v15 }
 0x346   : > { %2680 = vpow2.f32 %v1422_v16 }
 0x347   : > { %v2675_v17 = vpop.eup %2674 }
 0x348   : > { %v1424_v18 = vsel %vm1087_vm2, %v2675_v17, 0.0 }
 0x349   : > { %1425 = vadd.xlane.f32.xlu0 %v1424_v18  ;;  %v1897_v18 = vld [vmem:[%s3470_s4] sm:$0xff] }
 0x34b   : > { %v2677_v19 = vpop.eup %2676 }
 0x34c   : > { %v1427_v20 = vsel %vm1087_vm2, %v2677_v19, 0.0 }
 0x34d   : > { %1428 = vadd.xlane.f32.xlu1 %v1427_v20 }
 0x34f   : > { %v2679_v21 = vpop.eup %2678 }
 0x350   : > { %v2681_v22 = vpop.eup %2680  ;;  %v1430_v24 = vsel %vm1087_vm2, %v2679_v21, 0.0 }
 0x351   : > { %1431 = vadd.xlane.f32.xlu0 %v1430_v24  ;;  %v1433_v25 = vsel %vm1087_vm2, %v2681_v22, 0.0 }
 0x352   : > { %1434 = vadd.xlane.f32.xlu1 %v1433_v25 }
 0x363   : > { %673 = vrot.lane.b32.xlu1 %v3156_v11, %s2874_s28  ;;  %s2877_s28 = smov 8  }
 0x367   : > { %676 = vrot.lane.b32.xlu0 %v3156_v11, %s2875_s21  ;;  %s2878_s21 = smov 24  }
 0x3d6   : > { %v1426_v28 = vpop.xlane.xlu0 %1425 }
 0x3d7   : > { %2682 = vrcp.f32 %v1426_v28 }
 0x3da   : > { %v1429_v29 = vpop.xlane.xlu1 %1428 }
 0x3db   : > { %2684 = vrcp.f32 %v1429_v29 }
 0x3de   : > { %v1432_v31 = vpop.xlane.xlu0 %1431 }
 0x3df   : > { %2686 = vrcp.f32 %v1432_v31  ;;  %v1435_v32 = vpop.xlane.xlu1 %1434 }
 0x3e0   : > { %2688 = vrcp.f32 %v1435_v32 }
 0x3e1   : > { %v2683_v33 = vpop.eup %2682 }
 0x3e2   : > { %v1444_v34 = vmul.f32 %v2683_v33, %v2675_v17  ;;  %v677_v35 = vpop.permute.xlu0 %676 }
 0x3e3   : > { %v831_v36 = vcombine.low %v671_v27, %v677_v35  ;;  %v832_v37 = vcombine.high %v671_v27, %v677_v35  ;;  %v674_v38 = vpop.permute.xlu1 %673 }
 0x3e4   : > { %1448 = vst.msk [vmem:[%s3238_s13] sm:$0xff] %vm1087_vm2, %v1444_v34  ;;  %v815_v11 = vcombine.low %v668_v26, %v674_v38  ;;  %v816_v39 = vcombine.high %v668_v26, %v674_v38 }
 0x3e5   : > { %v2685_v40 = vpop.eup %2684  ;;  %v839_v41 = vrot.slane %v831_v36, %v3165_v23  ;;  %v846_v42 = vrot.slane %v832_v37, %v3165_v23 }
 0x3e6   : > { %v1445_v43 = vmul.f32 %v2685_v40, %v2677_v19  ;;  %v823_v44 = vrot.slane %v815_v11, %v3165_v23  ;;  %v830_v45 = vrot.slane %v816_v39, %v3165_v23  ;;  %v1898_v19 = vld [vmem:[%s3470_s4 + $0x8] sm:$0xff] }
 0x3e7   : > { %v2575_v20 = vpack.c.bf16 %v1898_v19, %v1897_v18 }
 0x3e8   : > { %1449 = vst.msk [vmem:[%s3238_s13 + $0x8] sm:$0xff] %vm1087_vm2, %v1445_v43  ;;  %v847_v46 = vcombine.low %v823_v44, %v839_v41  ;;  %v848_v47 = vcombine.high %v823_v44, %v839_v41  ;;  %v863_v48 = vcombine.low %v830_v45, %v846_v42  ;;  %v864_v49 = vcombine.high %v830_v45, %v846_v42  ;;  %v1899_v42 = vld [vmem:[%s3470_s4 + $0x10] sm:$0xff] }
 0x3e9   : > { %v2687_v50 = vpop.eup %2686 }
 0x3ea   : > { %v2689_v51 = vpop.eup %2688  ;;  %v1446_v52 = vmul.f32 %v2687_v50, %v2679_v21  ;;  %v855_v53 = vrot.slane %v847_v46, %v3167_v30  ;;  %v862_v54 = vrot.slane %v848_v47, %v3167_v30  ;;  %v871_v55 = vrot.slane %v863_v48, %v3167_v30 }
 0x3eb   : > { %v1447_v56 = vmul.f32 %v2689_v51, %v2681_v22  ;;  %v878_v57 = vrot.slane %v864_v49, %v3167_v30 }
 0x3ec   : > { %1450 = vst.msk [vmem:[%s3238_s13 + $0x10] sm:$0xff] %vm1087_vm2, %v1446_v52  ;;  %v1019_v58 = vcombine.low %v855_v53, %v862_v54  ;;  %v2402_v59 = vcombine.high %v855_v53, %v862_v54 }
 0x3ed   : > { %1451 = vst.msk [vmem:[%s3238_s13 + $0x18] sm:$0xff] %vm1087_vm2, %v1447_v56  ;;  %v1035_v60 = vcombine.low %v871_v55, %v878_v57  ;;  %v2403_v61 = vcombine.high %v871_v55, %v878_v57 }
 0x3ee   : > { %v1026_v62 = vrot.slane %v1019_v58, %v3165_v23  ;;  %v1034_v63 = vrot.slane %v2402_v59, %v3165_v23 }
 0x3ef   : > { %v1042_v2 = vrot.slane %v1035_v60, %v3165_v23  ;;  %v1050_v3 = vrot.slane %v2403_v61, %v3165_v23 }
 0x3f0   : > { %v1051_v4 = vcombine.low %v1026_v62, %v1034_v63  ;;  %v1052_v5 = vcombine.high %v1026_v62, %v1034_v63 }
 0x3f1   : > { %v1067_v6 = vcombine.low %v1042_v2, %v1050_v3  ;;  %v1068_v7 = vcombine.high %v1042_v2, %v1050_v3 }
 0x3f2   : > { %v1059_v9 = vrot.slane %v1051_v4, %v3167_v30  ;;  %v1066_v12 = vrot.slane %v1052_v5, %v3167_v30 }
 0x3f3   : > { %v1075_v10 = vrot.slane %v1067_v6, %v3167_v30  ;;  %v1082_v13 = vrot.slane %v1068_v7, %v3167_v30 }
 0x3f5   : > { %v1083_v14 = vcombine.low %v1059_v9, %v1075_v10  ;;  %v1084_v15 = vcombine.high %v1059_v9, %v1075_v10  ;;  %v1085_v16 = vcombine.low %v1066_v12, %v1082_v13  ;;  %v1086_v17 = vcombine.high %v1066_v12, %v1082_v13  ;;  %v2418_v13 = vld [vmem:[%s3471_s5] ss:$0 sm:$0xff] }
 0x3f7   : > { %2508 = vmatpush3.msra.mxu0 %v1083_v14  ;;  %2513 = vmatpush3.msra.mxu1 %v1084_v15 }
 0x3f8   : > { %2510 = vmatmul.mubr.msk.f32.vlgmr.msra.gmra.mrb[2].mxu0 %vm1087_vm2, %v1444_v34  ;;  %2515 = vmatmul.mubr.msk.f32.vlgmr.msra.gmra.mrb[8].mxu1 %vm1087_vm2, %v1445_v43  ;;  %v1900_v43 = vld [vmem:[%s3470_s4 + $0x18] sm:$0xff] }
 0x3f9   : > { %2517 = vmatprep.subr.mxu0 %v2862_v1  ;;  %2522 = vmatprep.subr.mxu1 %v2862_v1  ;;  %v2578_v48 = vpack.c.bf16 %v1900_v43, %v1899_v42 }
 0x3fa   : > { %2518 = vmatpush3.msra.mxu0 %v1085_v16  ;;  %2523 = vmatpush3.msra.mxu1 %v1086_v17 }
 0x3fb   : > { %2519 = vmatprep.mubr.msk.f32.mxu0 %vm2861_vm0, %v2862_v1  ;;  %2524 = vmatprep.mubr.msk.f32.mxu1 %vm2861_vm0, %v2862_v1 }
 0x3fc   : > { %2520 = vmatmul.mubr.msk.f32.vlgmr.msra.gmra.mrb[4].mxu0 %vm1087_vm2, %v1446_v52  ;;  %2525 = vmatmul.mubr.msk.f32.vlgmr.msra.gmra.mrb[10].mxu1 %vm1087_vm2, %v1447_v56 }
 0x3fd   : > { %2574 = vmatprep.subr.bf16.mxu0 %v2860_v0  ;;  %2535 = vmatprep.mubr.msk.f32.mxu0 %vm2861_vm0, %v2862_v1 }
 0x3fe   : > { %2580 = vmatprep.subr.bf16.mxu1 %v2860_v0  ;;  %2546 = vmatprep.mubr.msk.f32.mxu1 %vm2861_vm0, %v2862_v1 }
 0x3ff   : > { %2576 = vmatpush3.bf16.msra.mxu0 %v2575_v20 }
 0x400   : > { %2577 = vmatprep.subr.bf16.mxu0 %v2860_v0 }
 0x403   : > { %2579 = vmatpush3.bf16.msra.mxu0 %v2578_v48  ;;  %v2104_v48 = vld [vmem:[%s3476_s10 + $0x30] sm:$0xff] }
 0x404   : > { %2586 = vmatprep.subr.bf16.mxu0 %v2860_v0 }
 0x4cb   : > { %v1521_v21 = vpop.f32.mrb[2].mxu0  ;;  %v1594_v22 = vpop.f32.mrb[8].mxu1 }
 0x4cc   : > { %v2511_v24 = vpop.f32.mrb[3].mxu0  ;;  %v2516_v25 = vpop.f32.mrb[9].mxu1 }
 0x4cd   : > { %v2016_v24 = vld [vmem:[%s3474_s8 + $0x18] sm:$0xff] }
 0x4cf   : > { %v1667_v26 = vpop.f32.mrb[4].mxu0  ;;  %v1740_v27 = vpop.f32.mrb[10].mxu1 }
 0x4d0   : > { %v1744_v28 = vcombine.low %v1521_v21, %v1667_v26  ;;  %v1745_v29 = vcombine.high %v1521_v21, %v1667_v26  ;;  %v1760_v31 = vcombine.low %v1594_v22, %v1740_v27  ;;  %v1761_v32 = vcombine.high %v1594_v22, %v1740_v27  ;;  %v2521_v33 = vpop.f32.mrb[5].mxu0  ;;  %v2526_v34 = vpop.f32.mrb[11].mxu1  ;;  %v2014_v21 = vld [vmem:[%s3474_s8 + $0x8] sm:$0xff]  ;;  %v2098_v26 = vld [vmem:[%s3476_s10] sm:$0xff] }
 0x4d1   : > { %v2099_v27 = vld [vmem:[%s3476_s10 + $0x8] sm:$0xff]  ;;  %v2102_v33 = vld [vmem:[%s3476_s10 + $0x20] sm:$0xff] }
 0x4d2   : > { %v1752_v35 = vrot.slane %v1744_v28, %v3165_v23  ;;  %v1759_v36 = vrot.slane %v1745_v29, %v3165_v23  ;;  %v1768_v37 = vrot.slane %v1760_v31, %v3165_v23  ;;  %v1775_v38 = vrot.slane %v1761_v32, %v3165_v23  ;;  %v2100_v28 = vld [vmem:[%s3476_s10 + $0x10] sm:$0xff]  ;;  %v2101_v31 = vld [vmem:[%s3476_s10 + $0x18] sm:$0xff]  ;;  %v2103_v34 = vld [vmem:[%s3476_s10 + $0x28] sm:$0xff] }
 0x4d3   : > { %v2587_v29 = vpack.c.bf16 %v2099_v27, %v2098_v26  ;;  %v2590_v32 = vpack.c.bf16 %v2101_v31, %v2100_v28 }
 0x4d4   : > { %v1776_v11 = vcombine.low %v1752_v35, %v1768_v37  ;;  %v1777_v39 = vcombine.high %v1752_v35, %v1768_v37  ;;  %v1792_v40 = vcombine.low %v1759_v36, %v1775_v38  ;;  %v1793_v41 = vcombine.high %v1759_v36, %v1775_v38 }
 0x4d5   : > { %v2593_v35 = vpack.c.bf16 %v2103_v34, %v2102_v33 }
 0x4d6   : > { %v1784_v44 = vrot.slane %v1776_v11, %v3167_v30  ;;  %v1791_v45 = vrot.slane %v1777_v39, %v3167_v30  ;;  %v1800_v46 = vrot.slane %v1792_v40, %v3167_v30  ;;  %v1807_v47 = vrot.slane %v1793_v41, %v3167_v30 }
 0x4d8   : > { %v1812_v49 = vcombine.low %v1784_v44, %v1791_v45  ;;  %v2416_v50 = vcombine.high %v1784_v44, %v1791_v45  ;;  %v1828_v51 = vcombine.low %v1800_v46, %v1807_v47  ;;  %v2417_v52 = vcombine.high %v1800_v46, %v1807_v47  ;;  %v2420_v44 = vld [vmem:[%s3472_s6] ss:$0 sm:$0xff] }
 0x4d9   : > { %v2421_v46 = vld [vmem:[%s3473_s7] ss:$0 sm:$0xff] }
 0x4da   : > { %v1819_v53 = vrot.slane %v1812_v49, %v3165_v23  ;;  %v1827_v54 = vrot.slane %v2416_v50, %v3165_v23  ;;  %v1835_v55 = vrot.slane %v1828_v51, %v3165_v23  ;;  %v1843_v56 = vrot.slane %v2417_v52, %v3165_v23  ;;  %v2105_v49 = vld [vmem:[%s3476_s10 + $0x38] sm:$0xff]  ;;  %v2422_v51 = vld [vmem:[%s3475_s9] ss:$0 sm:$0xff] }
 0x4db   : > { %v2596_v50 = vpack.c.bf16 %v2105_v49, %v2104_v48 }
 0x4dc   : > { %v1845_v57 = vcombine.high %v1819_v53, %v1827_v54  ;;  %v1861_v58 = vcombine.high %v1835_v55, %v1843_v56  ;;  %v1844_v59 = vcombine.low %v1819_v53, %v1827_v54  ;;  %v1860_v60 = vcombine.low %v1835_v55, %v1843_v56  ;;  %v2424_v56 = vld [vmem:[%s3477_s11] ss:$0 sm:$0xff] }
 0x4de   : > { %v1859_v61 = vrot.slane %v1845_v57, %v3167_v30  ;;  %v1875_v62 = vrot.slane %v1861_v58, %v3167_v30  ;;  %v1852_v63 = vrot.slane %v1844_v59, %v3167_v30  ;;  %v1868_v2 = vrot.slane %v1860_v60, %v3167_v30 }
 0x4e0   : > { %v1878_v3 = vcombine.low %v1859_v61, %v1875_v62  ;;  %v1877_v4 = vcombine.high %v1852_v63, %v1868_v2  ;;  %v1879_v5 = vcombine.high %v1859_v61, %v1875_v62  ;;  %v1876_v6 = vcombine.low %v1852_v63, %v1868_v2 }
 0x4e2   : > { %1885 = vrot.lane.b32.xlu0 %v1878_v3, %s2876_s17  ;;  %1881 = vrot.lane.b32.xlu1 %v1877_v4, %s2877_s28  ;;  %s2758_s17 = sshll.u32 %s2879_s20, 4  ;;  %s2759_s17 = int_to_ptr.vmem [resolvable:$false] %s2758_s17 }
 0x4e3   : > { %s2760_s13 = scalar_lea.vmem %s2759_s17, 1024  ;;  %p2761_p8 = scmp.lt.s32.totalorder %s3383_s26, %s2759_s17 }
 0x4e4   : > { %p2762_p9 = scmp.lt.s32.totalorder %s2760_s13, %s2754_s23 }
 0x4e6   : > { %1889 = vrot.lane.b32.xlu1 %v1879_v5, %s2878_s21  ;;  %p2763_p0 = por %p2762_p9, %p2761_p8 }
 0x4e8   : > { %p2764_p1 = pnand %p2763_p0, %p2757_p5 }
 0x554   : > { %v1882_v23 = vpop.permute.xlu1 %1881  ;;  %v1886_v7 = vpop.permute.xlu0 %1885 }
 0x555   : > { %v1892_v9 = vsel %vm1087_vm2, %v1876_v6, %v1882_v23 }
 0x556   : > { %v1894_v12 = vsel %vm1893_vm3, %v1892_v9, %v1886_v7 }
 0x558   : > { %v1890_v10 = vpop.permute.xlu1 %1889 }
 0x559   : > { %v1896_v30 = vsel %vm1895_vm4, %v1894_v12, %v1890_v10 }
 0x55a   : > { %2536 = vmatmul.mubr.msk.f32.vlgmr.msra.gmra.mrb[6].mxu0 %vm571_vm1, %v1896_v30 }
 0x55b   : > { %2565 = vmatprep.mubr.msk.f32.mxu0 %vm2861_vm0, %v2862_v1  ;;  %v2013_v1 = vld [vmem:[%s3474_s8] sm:$0xff]  ;;  %2588 = vmatpush3.bf16.msra.mxu0 %v2587_v29 }
 0x55c   : > { %v2581_v22 = vpack.c.bf16 %v2014_v21, %v2013_v1  ;;  %2589 = vmatprep.subr.bf16.mxu0 %v2860_v0 }
 0x55e   : > { %2582 = vmatpush3.bf16.msra.mxu1 %v2581_v22 }
 0x55f   : > { %2583 = vmatprep.subr.bf16.mxu1 %v2860_v0  ;;  %2591 = vmatpush3.bf16.msra.mxu0 %v2590_v32 }
 0x560   : > { %2592 = vmatprep.subr.bf16.mxu0 %v2860_v0 }
 0x563   : > { %2594 = vmatpush3.bf16.msra.mxu0 %v2593_v35 }
 0x564   : > { %2595 = vmatprep.subr.bf16.mxu0 %v2860_v0 }
 0x567   : > { %2597 = vmatpush3.bf16.msra.mxu0 %v2596_v50 }
 0x62d   : > { %v1977_v14 = vpop.f32.mrb[6].mxu0 }
 0x62e   : > { %v1978_v15 = vadd.f32 %v2418_v13, %v1977_v14  ;;  %v2537_v16 = vpop.f32.mrb[7].mxu0 }
 0x630   : > { %v1981_v17 = vadd.f32 %v1978_v15, %v3146_v8  ;;  %v2015_v8 = vld [vmem:[%s3474_s8 + $0x10] sm:$0xff] }
 0x631   : > { %v2584_v25 = vpack.c.bf16 %v2016_v24, %v2015_v8 }
 0x632   : > { %v1982_v18 = vsel %vm571_vm1, %v1981_v17, 0.0  ;;  %v1985_v19 = vmul.f32 %v1981_v17, %v1981_v17 }
 0x633   : > { %1983 = vadd.xlane.f32.xlu0 %v1982_v18  ;;  %2585 = vmatpush3.bf16.msra.mxu1 %v2584_v25 }
 0x634   : > { %v1986_v20 = vsel %vm571_vm1, %v1985_v19, 0.0 }
 0x635   : > { %1987 = vadd.xlane.f32.xlu1 %v1986_v20 }
 0x6c0   : > { %v1984_v36 = vpop.xlane.xlu0 %1983 }
 0x6c1   : > { %v1989_v37 = vmul.f32 0.03125, %v1984_v36 }
 0x6c2   : > { %v1988_v38 = vpop.xlane.xlu1 %1987 }
 0x6c3   : > { %v1991_v11 = vmul.f32 %v1989_v37, %v1989_v37  ;;  %v1990_v39 = vmul.f32 0.03125, %v1988_v38  ;;  %v1993_v42 = vsub.f32 %v1981_v17, %v1989_v37 }
 0x6c5   : > { %v1992_v40 = vsub.f32 %v1990_v39, %v1991_v11 }
 0x6c7   : > { %v1994_v41 = vadd.f32 1e-06, %v1992_v40 }
 0x6c9   : > { %2690 = vrsqrt.f32 %v1994_v41 }
 0x6d3   : > { %v2691_v43 = vpop.eup %2690 }
 0x6d4   : > { %v1996_v45 = vmul.f32 %v2691_v43, %v1993_v42 }
 0x6d6   : > { %v2004_v0 = vmul.f32 %v2420_v44, %v1996_v45 }
 0x6d8   : > { %v2012_v47 = vadd.f32 %v2421_v46, %v2004_v0 }
 0x6da   : > { %2547 = vmatmul.mubr.msk.f32.vlgmr.msra.gmra.mrb[12].mxu1 %vm571_vm1, %v2012_v47 }
 0x7ad   : > { %v2093_v52 = vpop.f32.mrb[12].mxu1 }
 0x7ae   : > { %v2094_v53 = vadd.f32 %v2422_v51, %v2093_v52  ;;  %v2548_v54 = vpop.f32.mrb[13].mxu1 }
 0x7b0   : > { %v2097_v55 = vmax.f32 %v2094_v53, 0.0 }
 0x7b2   : > { %2566 = vmatmul.mubr.msk.f32.vlgmr.msra.gmra.mrb[8].mxu0 %vm2113_vm5, %v2097_v55 }
 0x885   : > { %v2183_v57 = vpop.f32.mrb[8].mxu0 }
 0x886   : > { %v2184_v58 = vadd.f32 %v2424_v56, %v2183_v57  ;;  %v2567_v59 = vpop.f32.mrb[9].mxu0 }
 0x888   : > { %v2187_v60 = vadd.f32 %v2184_v58, %v2012_v47 }
 0x88a   : > { %v2188_v61 = vsel %vm571_vm1, %v2187_v60, 0.0  ;;  %v2191_v62 = vmul.f32 %v2187_v60, %v2187_v60 }
 0x88b   : > { %2189 = vadd.xlane.f32.xlu0 %v2188_v61 }
 0x88c   : > { %v2192_v63 = vsel %vm571_vm1, %v2191_v62, 0.0 }
 0x88f   : > { %2193 = vadd.xlane.f32.xlu0 %v2192_v63 }
 0x890   : > { %2767 = shalt.err (!%p2764_p1)
}
 0x891   : > { %s2768_s21 = scalar_lea.hbm %s3381_s24, 512  ;;  %s2772_s25 = scalar_lea.hbm %s3481_s15, 1024 }
 0x892   : > { %p2769_p11 = scmp.ne.s32.totalorder %s3381_s24, %s2768_s21  ;;  %p2773_p4 = scmp.lt.u32.totalorder %s3381_s24, %s3481_s15 }
 0x893   : > { %p2774_p10 = scmp.lt.u32.totalorder %s2772_s25, %s2768_s21  ;;  %p2776_p13 = scmp.lt.u32.totalorder %s2768_s21, %s3381_s24 }
 0x894   : > { %p2770_p12 = pnand %p2769_p11, %p3515_p3 }
 0x895   : > { %p2775_p6 = por %p2774_p10, %p2773_p4 }
 0x896   : > { %p2771_p2 = pneg %p2770_p12 }
 0x897   : > { %p2777_p7 = por %p2776_p13, %p2775_p6 }
 0x899   : > { %p2778_p5 = pnand %p2777_p7, %p2771_p2 }
 0x89b   : > { %2781 = shalt.err (!%p2778_p5)
}
 0x89c   : > { %s2880_s23 = smov 128   ;;  %v2426_v12 = vld [vmem:[%s3478_s12] ss:$0 sm:$0xff]  ;;  %s3517_s18 = sld [smem:[#allocation22_spill]] }
 0x89d   : > { %2603 = dma.vmem_to_hbm [thread:$0]  (%p3515_p3), %s3383_s26, 512, %s3381_s24, %s2226_s29, %s2880_s23, %s2880_s23, %s2877_s28  }
 0x89e   : > { %s3516_s28 = sld [smem:[#allocation21_spill]]  ;;  %s2430_s26 = sshll.u32 %s2983_s22, 7 }
 0x89f   : > { %s550_s24 = scalar_lea.vmem [#allocation7], %s3113_s27  ;;  %s2221_s17 = scalar_lea.sflag [#allocation4], %s3110_s16 }
 0x8a0   : > { %s2239_s29 = sshll.u32 %s550_s24, 4  ;;  %s2881_s22 = smov [#allocation7]   ;;  %s3423_s29 = int_to_ptr.vmem [resolvable:$true] %s2239_s29 }
 0x8a1   : > { %s2782_s13 = scalar_lea.vmem %s3423_s29, 128  ;;  %s2786_s27 = sshll.u32 %s2881_s22, 4  ;;  %s2787_s27 = int_to_ptr.vmem [resolvable:$false] %s2786_s27 }
 0x8a2   : > { %s3518_s23 = smov %s3517_s18  ;;  %s3421_s20 = scalar_lea.hbm %s3517_s18, %s2430_s26 }
 0x8a3   : > { %p2783_p8 = scmp.ne.s32.totalorder %s3423_s29, %s2782_s13  ;;  %s2788_s21 = scalar_lea.vmem %s2787_s27, 256 }
 0x8a4   : > { %v2427_v13 = vld [vmem:[%s3516_s28] ss:$0 sm:$0xff]  ;;  %p2789_p1 = scmp.lt.s32.totalorder %s3423_s29, %s2787_s27  ;;  %p2790_p11 = scmp.lt.s32.totalorder %s2788_s21, %s2782_s13 }
 0x8a5   : > { %p2784_p9 = pnand %p2783_p8, %p3515_p3 }
 0x8a6   : > { %p2791_p12 = por %p2790_p11, %p2789_p1 }
 0x8a7   : > { %p2785_p0 = pneg %p2784_p9 }
 0x8a9   : > { %p2792_p2 = pnand %p2791_p12, %p2785_p0 }
 0x918   : > { %v2190_v2 = vpop.xlane.xlu0 %2189 }
 0x919   : > { %v2195_v3 = vmul.f32 0.03125, %v2190_v2 }
 0x91b   : > { %v2197_v5 = vmul.f32 %v2195_v3, %v2195_v3  ;;  %v2199_v9 = vsub.f32 %v2187_v60, %v2195_v3 }
 0x91c   : > { %v2194_v4 = vpop.xlane.xlu0 %2193 }
 0x91d   : > { %v2196_v6 = vmul.f32 0.03125, %v2194_v4 }
 0x91f   : > { %v2198_v23 = vsub.f32 %v2196_v6, %v2197_v5 }
 0x921   : > { %v2200_v7 = vadd.f32 1e-06, %v2198_v23 }
 0x923   : > { %2692 = vrsqrt.f32 %v2200_v7 }
 0x92d   : > { %v2693_v10 = vpop.eup %2692 }
 0x92e   : > { %v2202_v30 = vmul.f32 %v2693_v10, %v2199_v9 }
 0x930   : > { %v2210_v14 = vmul.f32 %v2426_v12, %v2202_v30 }
 0x932   : > { %v2218_v15 = vadd.f32 %v2427_v13, %v2210_v14 }
 0x934   : > { %2219 = vst.msk [vmem:[%s550_s24] sm:$0xff] %vm571_vm1, %v2218_v15 }
 0x935   : > { %2795 = shalt.err (!%p2792_p2)
}
 0x936   : > { %s2796_s16 = scalar_lea.hbm %s3421_s20, 128  ;;  %s2800_s26 = scalar_lea.hbm %s3518_s23, 256 }
 0x937   : > { %p2797_p4 = scmp.ne.s32.totalorder %s3421_s20, %s2796_s16  ;;  %p2801_p13 = scmp.lt.u32.totalorder %s3421_s20, %s3518_s23 }
 0x938   : > { %p2802_p7 = scmp.lt.u32.totalorder %s2800_s26, %s2796_s16  ;;  %p2804_p8 = scmp.lt.u32.totalorder %s2796_s16, %s3421_s20 }
 0x939   : > { %p2798_p10 = pnand %p2797_p4, %p3515_p3 }
 0x93a   : > { %p2803_p5 = por %p2802_p7, %p2801_p13 }
 0x93b   : > { %p2799_p6 = pneg %p2798_p10 }
 0x93c   : > { %p2805_p9 = por %p2804_p8, %p2803_p5 }
 0x93e   : > { %p2806_p0 = pnand %p2805_p9, %p2799_p6 }
 0x940   : > { %2809 = shalt.err (!%p2806_p0)
}
 0x941   : > { %2602 = dma.vmem_to_hbm [thread:$0]  (%p3515_p3), %s3423_s29, 128, %s3421_s20, %s2221_s17  }
 0x942 PF: > { %s3519_s25 = sld [smem:[#allocation14_spill]]  ;;  %s3520_s18 = sld [smem:[#allocation19_spill]] }
 0x943   : > { %s3521_s13 = sld [smem:[#allocation16_spill]] }
 0x948   : > { %s2267_s22 = sand.u32 1, %s3519_s25   ;;  %p3522_p1 = scmp.ne.s32.totalorder %s3520_s18, 0 }
 0x949   : > { %p3523_p11 = scmp.ge.s32.totalorder %s3521_s13, 2  ;;  %s2268_s27 = scalar_lea.sflag [#allocation4], %s2267_s22 }
 0x94b   : > { %p2614_p12 = pnand %p3523_p11, %p3522_p1 }
 0x94d   : > { %2835 = dma.done.wait (!%p2614_p12), %s2268_s27, 128  }
 0x94e   : > { %2837 = vsyncadd (!%p2614_p12), %s2268_s27, 4294967168  ;;  %s2277_s21 = scalar_lea.sflag [#allocation9], %s2267_s22 }
 0x94f   : > { %2839 = dma.done.wait (!%p2614_p12), %s2277_s21, 512  }
 0x950   : > { %2841 = vsyncadd (!%p2614_p12), %s2277_s21, 4294966784  ;;  %s3524_s21 = sld [smem:[#allocation17_spill]]  ;;  %s3525_s30 = sld [smem:[#allocation15_spill]] }
 0x951   : > { %s3526_s20 = sld [smem:[#allocation18_spill]]  ;;  %s3527_s18 = smov %s2848_s19 }
 0x956   : > { %p35_p3 = scmp.ge.s32.totalorder %s3524_s21, 4   ;;  %s3528_s19 = smov %s3525_s30 }
 0x958   :  { %37 = sbr.rel (!%p35_p3) target bundleno = 13 (0xd), region = 151 }
 0x95f   :  { %2282 = vsyncpa [#allocation3], 1 }
 0x960   :  { %2284 = vsyncpa [#allocation3 + $0x1], 1 }
 0x961   :  { %2285 = vsyncpa [#allocation6], 1 }
 0x962   :  { %2287 = vsyncpa [#allocation6 + $0x1], 1 }
 0x963   :  { %2288 = vsyncpa [#allocation4], 1 }
 0x964   :  { %2290 = vsyncpa [#allocation4 + $0x1], 1 }
 0x965   :  { %2291 = vsyncpa [#allocation9], 1 }
 0x966   :  { %2293 = vsyncpa [#allocation9 + $0x1], 1 }

</bundles_post_ra>
